<compile_context>
chip_gen: v6e
topology: v6e:2x2x1
jax: 0.10.0
libtpu: 0.0.40
codegen_flags: <defaults>
</compile_context>

<pallas_src>
import functools
import math

import jax
import jax.numpy as jnp
from jax import lax
from jax.experimental import pallas as pl
from jax.experimental.pallas import tpu as pltpu

_NEG = -1e30  # large finite negative: safe even for fully-masked rows


def _attn_kernel(x_ref, wqkv_ref, wp_ref, cos_ref, sin_ref, o_ref,
                 q_scr, k_scr, v_scr, *, tile):
    h = pl.program_id(1)
    f32 = jnp.float32
    bf16 = jnp.bfloat16

    T = x_ref.shape[1]
    hd = wp_ref.shape[1]
    hd2 = cos_ref.shape[1]
    n_q = T // tile

    xb = x_ref[0]                                                  # (T, C) bf16

    # Fused QKV projection: one wide MXU pass; slab columns are
    # [q_even | q_odd | k_even | k_odd | v]; attention scale pre-folded into q.
    qkv = jnp.dot(xb, wqkv_ref[0], preferred_element_type=f32)     # (T, 3*hd)

    q_e = qkv[:, 0:hd2]
    q_o = qkv[:, hd2:hd]
    k_e = qkv[:, hd:hd + hd2]
    k_o = qkv[:, hd + hd2:2 * hd]
    v = qkv[:, 2 * hd:]

    cos = cos_ref[...]                                             # (T, hd2) f32
    sin = sin_ref[...]

    # RoPE in split even/odd form; concatenate rotated halves so the score
    # matmul contracts over the full head dim in a single dot.
    qa = q_e * cos - q_o * sin
    qb = q_o * cos + q_e * sin
    ka = k_e * cos - k_o * sin
    kb = k_o * cos + k_e * sin

    q_scr[...] = jnp.concatenate([qa, qb], axis=-1).astype(bf16)   # (T, hd)
    k_scr[...] = jnp.concatenate([ka, kb], axis=-1).astype(bf16)
    v_scr[...] = v.astype(bf16)

    # Diagonal-tile causal mask, hoisted out of both loops.
    row_loc = lax.broadcasted_iota(jnp.int32, (tile, 1), 0)
    col_loc = lax.broadcasted_iota(jnp.int32, (1, tile), 1)
    diag_mask = col_loc <= row_loc                                 # (tile, tile)

    @pl.loop(0, n_q)
    def _(qi):
        q_off = pl.multiple_of(qi * tile, tile)
        qt = q_scr[pl.ds(q_off, tile), :]                          # (tile, hd)

        def kv_step(j, carry):
            # Strictly-below-diagonal KV tile: no causal masking needed.
            m, l, acc = carry
            off = pl.multiple_of(j * tile, tile)
            kt = k_scr[pl.ds(off, tile), :]
            vt = v_scr[pl.ds(off, tile), :]
            s = lax.dot_general(qt, kt, (((1,), (1,)), ((), ())),
                                preferred_element_type=f32)        # (tile, tile)
            m_new = jnp.maximum(m, jnp.max(s, axis=-1, keepdims=True))
            alpha = jnp.exp(m - m_new)
            p = jnp.exp(s - m_new)
            l = alpha * l + jnp.sum(p, axis=-1, keepdims=True)
            acc = alpha * acc + jnp.dot(p.astype(bf16), vt,
                                        preferred_element_type=f32)
            return m_new, l, acc

        m0 = jnp.full((tile, 1), _NEG, f32)
        l0 = jnp.zeros((tile, 1), f32)
        a0 = jnp.zeros((tile, hd), f32)
        m, l, acc = lax.fori_loop(0, qi, kv_step, (m0, l0, a0))

        # Diagonal KV tile: the only one that needs masking.
        kt = k_scr[pl.ds(q_off, tile), :]
        vt = v_scr[pl.ds(q_off, tile), :]
        s = lax.dot_general(qt, kt, (((1,), (1,)), ((), ())),
                            preferred_element_type=f32)
        s = jnp.where(diag_mask, s, _NEG)
        m_new = jnp.maximum(m, jnp.max(s, axis=-1, keepdims=True))
        alpha = jnp.exp(m - m_new)
        p = jnp.exp(s - m_new)
        l = alpha * l + jnp.sum(p, axis=-1, keepdims=True)
        acc = alpha * acc + jnp.dot(p.astype(bf16), vt,
                                    preferred_element_type=f32)

        # Deferred normalization: tile reciprocals on the EUP, not tile*T divs.
        y = acc * pl.reciprocal(l, approx=True)                    # (tile, hd)

        contrib = jnp.dot(y.astype(bf16), wp_ref[0],
                          preferred_element_type=f32)              # (tile, C)

        @pl.when(h == 0)
        def _():
            o_ref[0, pl.ds(q_off, tile), :] = contrib

        @pl.when(h > 0)
        def _():
            o_ref[0, pl.ds(q_off, tile), :] += contrib


def prepare_attention_weights(w_attn, w_proj, n_head):
    """Hoisted weight re-layout (do this once, not per forward call).

    Returns:
      w_qkv: (H, C, 3*hd) bf16, columns [q_even|q_odd|k_even|k_odd|v],
             with the 1/sqrt(hd) attention scale folded into the q columns.
      wp_t : (H, hd, C)   bf16 per-head slice of the output projection.
    """
    C = w_attn.shape[1]
    hd = C // n_head
    scale = 1.0 / math.sqrt(hd)
    wq = w_attn[:C].reshape(n_head, hd, C) * scale     # scale commutes with RoPE
    wk = w_attn[C:2 * C].reshape(n_head, hd, C)
    wv = w_attn[2 * C:].reshape(n_head, hd, C)
    slab = jnp.concatenate(
        [wq[:, 0::2], wq[:, 1::2], wk[:, 0::2], wk[:, 1::2], wv], axis=1)
    w_qkv = jnp.swapaxes(slab, 1, 2).astype(jnp.bfloat16)          # (H, C, 3hd)
    wp_t = w_proj.T.reshape(n_head, hd, C).astype(jnp.bfloat16)    # (H, hd, C)
    return w_qkv, wp_t


def _pick_tile(T):
    for t in (512, 256, 128):
        if T % t == 0:
            return t
    return T


def causal_self_attention(x, w_qkv, wp_t, freqs_cos, freqs_sin):
    """x: (B,T,C); w_qkv: (H,C,3*hd) bf16; wp_t: (H,hd,C) bf16; cos/sin: (T,hd//2)."""
    B, T, C = x.shape
    H, hd = wp_t.shape[0], wp_t.shape[1]
    hd2 = hd // 2
    tile = _pick_tile(T)
    f32 = jnp.float32
    bf16 = jnp.bfloat16

    kernel = functools.partial(_attn_kernel, tile=tile)

    # Rough VMEM budget (double-buffered blocks + scratch + tile temporaries).
    est = (2 * T * C * 2                      # x blocks (bf16, db)
           + 2 * (C * 3 * hd + hd * C) * 2    # weight slabs (bf16, db)
           + 2 * 2 * T * hd2 * 4              # cos/sin (f32, db)
           + 2 * T * C * 4                    # output block (f32, db)
           + 3 * T * hd * 2                   # q/k/v scratch (bf16)
           + 2 * T * 3 * hd * 4               # qkv + RoPE temporaries (f32)
           + 6 * tile * tile * 4              # per-tile score/prob temporaries
           + 6 * tile * hd * 4                # per-tile acc/k/v temporaries
           + (4 << 20))
    vmem_limit = int(min(max(est, 16 << 20), 64 << 20))

    head_spec = lambda b, h: (h, 0, 0)
    return pl.pallas_call(
        kernel,
        out_shape=jax.ShapeDtypeStruct((B, T, C), f32),
        grid_spec=pltpu.PrefetchScalarGridSpec(
            num_scalar_prefetch=0,
            grid=(B, H),  # x / output blocks resident across the (inner) head axis
            in_specs=[
                pl.BlockSpec((1, T, C), lambda b, h: (b, 0, 0)),     # x
                pl.BlockSpec((1, C, 3 * hd), head_spec),             # fused qkv slab
                pl.BlockSpec((1, hd, C), head_spec),                 # proj slab
                pl.BlockSpec((T, hd2), lambda b, h: (0, 0)),         # cos
                pl.BlockSpec((T, hd2), lambda b, h: (0, 0)),         # sin
            ],
            out_specs=pl.BlockSpec((1, T, C), lambda b, h: (b, 0, 0)),
            scratch_shapes=[
                pltpu.VMEM((T, hd), bf16),    # rotated, pre-scaled Q
                pltpu.VMEM((T, hd), bf16),    # rotated K
                pltpu.VMEM((T, hd), bf16),    # V
            ]),
        compiler_params=pltpu.CompilerParams(
            # head axis must stay 'arbitrary': heads accumulate into one block.
            dimension_semantics=("parallel", "arbitrary"),
            vmem_limit_bytes=vmem_limit),
    )(x.astype(bf16), w_qkv, wp_t, freqs_cos.astype(f32), freqs_sin.astype(f32))


def ref_causal_self_attention(x, w_attn, w_proj, freqs_cos, freqs_sin, n_head):
    """Pure-JAX f32 reference reproducing the PyTorch forward exactly."""
    B, T, C = x.shape
    hd = C // n_head
    qkv = x @ w_attn.T
    q, k, v = jnp.split(qkv, 3, axis=-1)

    def heads(t):
        return jnp.transpose(t.reshape(B, T, n_head, hd), (0, 2, 1, 3))

    q, k, v = heads(q), heads(k), heads(v)

    def rope(t):
        tr = t.reshape(B, n_head, T, hd // 2, 2)
        te, to = tr[..., 0], tr[..., 1]
        c = freqs_cos[None, None]
        s = freqs_sin[None, None]
        re = te * c - to * s
        im = te * s + to * c
        return jnp.stack([re, im], axis=-1).reshape(B, n_head, T, hd)

    q, k = rope(q), rope(k)
    scores = jnp.einsum('bhtd,bhsd->bhts', q, k) / math.sqrt(hd)
    mask = jnp.tril(jnp.ones((T, T), bool))
    scores = jnp.where(mask, scores, -jnp.inf)
    p = jax.nn.softmax(scores, axis=-1)
    y = jnp.einsum('bhts,bhsd->bhtd', p, v)
    y = jnp.transpose(y, (0, 2, 1, 3)).reshape(B, T, C)
    return y @ w_proj.T


if __name__ == "__main__":
    B, T, C, n_head = 2, 8, 32, 4
    hd = C // n_head

    key = jax.random.PRNGKey(0)
    kx, ka, kp = jax.random.split(key, 3)
    x = jax.random.normal(kx, (B, T, C), jnp.float32)

    # Deterministic parameter init (xavier-uniform-style); cfg.bias = False.
    lim_a = math.sqrt(6.0 / (C + 3 * C))
    w_attn = jax.random.uniform(ka, (3 * C, C), jnp.float32, -lim_a, lim_a)
    lim_p = math.sqrt(6.0 / (C + C))
    w_proj = jax.random.uniform(kp, (C, C), jnp.float32, -lim_p, lim_p)

    # freqs_cis (T, hd//2) passed as separate cos / sin.
    inv_freq = 1.0 / (10000.0 ** (jnp.arange(0, hd, 2, dtype=jnp.float32) / hd))
    angles = jnp.arange(T, dtype=jnp.float32)[:, None] * inv_freq[None, :]
    freqs_cos, freqs_sin = jnp.cos(angles), jnp.sin(angles)

    # Weight re-layout + scale folding hoisted out of the per-call path.
    w_qkv, wp_t = prepare_attention_weights(w_attn, w_proj, n_head)

    out = causal_self_attention(x, w_qkv, wp_t, freqs_cos, freqs_sin)
    out = jax.block_until_ready(out)

    ref = ref_causal_self_attention(x, w_attn, w_proj, freqs_cos, freqs_sin, n_head)
    assert out.shape == (B, T, C) and out.dtype == jnp.float32
    # bf16 MXU inputs -> bf16-level tolerance.
    assert jnp.allclose(out, ref, atol=2e-2, rtol=2e-2), float(
        jnp.max(jnp.abs(out - ref)))
    print("KERNEL_OK")
</pallas_src>

<mosaic_0001>
module attributes {stable_mosaic.version = 11 : i64} {
  func.func @_attn_kernel(%arg0: i32, %arg1: i32, %arg2: memref<1x8x32xbf16, #tpu.memory_space<vmem>>, %arg3: memref<1x32x24xbf16, #tpu.memory_space<vmem>>, %arg4: memref<1x8x32xbf16, #tpu.memory_space<vmem>>, %arg5: memref<8x4xf32, #tpu.memory_space<vmem>>, %arg6: memref<8x4xf32, #tpu.memory_space<vmem>>, %arg7: memref<1x8x32xf32, #tpu.memory_space<vmem>>, %arg8: memref<8x8xbf16, #tpu.memory_space<vmem>>, %arg9: memref<8x8xbf16, #tpu.memory_space<vmem>>, %arg10: memref<8x8xbf16, #tpu.memory_space<vmem>>) attributes {dimension_semantics = [#tpu.dimension_semantics<parallel>, #tpu.dimension_semantics<arbitrary>], iteration_bounds = array<i64: 2, 4>, scalar_prefetch = 0 : i64, scratch_operands = 3 : i64, tpu.core_type = #tpu.core_type<tc>, window_params = [{transform_indices = @transform_0, window_bounds = array<i64: 1, 8, 32>}, {transform_indices = @transform_1, window_bounds = array<i64: 1, 32, 24>}, {transform_indices = @transform_2, window_bounds = array<i64: 1, 8, 32>}, {pipeline_mode = #tpu.pipeline_mode<synchronous>, transform_indices = @transform_3, window_bounds = array<i64: 8, 4>}, {pipeline_mode = #tpu.pipeline_mode<synchronous>, transform_indices = @transform_4, window_bounds = array<i64: 8, 4>}, {transform_indices = @transform_5, window_bounds = array<i64: 1, 8, 32>}]} {
    %c0 = arith.constant 0 : index
    %c0_0 = arith.constant 0 : index
    %c0_1 = arith.constant 0 : index
    %0 = vector.load %arg2[%c0, %c0_0, %c0_1] : memref<1x8x32xbf16, #tpu.memory_space<vmem>>, vector<1x8x32xbf16>
    %1 = vector.shape_cast %0 : vector<1x8x32xbf16> to vector<8x32xbf16>
    %c0_2 = arith.constant 0 : index
    %c0_3 = arith.constant 0 : index
    %c0_4 = arith.constant 0 : index
    %2 = vector.load %arg3[%c0_2, %c0_3, %c0_4] : memref<1x32x24xbf16, #tpu.memory_space<vmem>>, vector<1x32x24xbf16>
    %3 = vector.shape_cast %2 : vector<1x32x24xbf16> to vector<32x24xbf16>
    %cst = arith.constant dense<0.000000e+00> : vector<8x24xf32>
    %4 = tpu.matmul %1, %3, %cst {dimension_numbers = #tpu.dot_dimension_numbers<[1], [0], [0], [1], [0, 0, 1, 1], [], []>} : vector<8x32xbf16>, vector<32x24xbf16>, vector<8x24xf32> -> vector<8x24xf32>
    %5 = vector.extract_strided_slice %4 {offsets = [0, 0], sizes = [8, 4], strides = [1, 1]} : vector<8x24xf32> to vector<8x4xf32>
    %6 = vector.extract_strided_slice %4 {offsets = [0, 4], sizes = [8, 4], strides = [1, 1]} : vector<8x24xf32> to vector<8x4xf32>
    %7 = vector.extract_strided_slice %4 {offsets = [0, 8], sizes = [8, 4], strides = [1, 1]} : vector<8x24xf32> to vector<8x4xf32>
    %8 = vector.extract_strided_slice %4 {offsets = [0, 12], sizes = [8, 4], strides = [1, 1]} : vector<8x24xf32> to vector<8x4xf32>
    %9 = vector.extract_strided_slice %4 {offsets = [0, 16], sizes = [8, 8], strides = [1, 1]} : vector<8x24xf32> to vector<8x8xf32>
    %c0_5 = arith.constant 0 : index
    %c0_6 = arith.constant 0 : index
    %10 = vector.load %arg5[%c0_5, %c0_6] : memref<8x4xf32, #tpu.memory_space<vmem>>, vector<8x4xf32>
    %c0_7 = arith.constant 0 : index
    %c0_8 = arith.constant 0 : index
    %11 = vector.load %arg6[%c0_7, %c0_8] : memref<8x4xf32, #tpu.memory_space<vmem>>, vector<8x4xf32>
    %12 = arith.mulf %5, %10 : vector<8x4xf32>
    %13 = arith.mulf %6, %11 : vector<8x4xf32>
    %14 = arith.subf %12, %13 : vector<8x4xf32>
    %15 = arith.mulf %6, %10 : vector<8x4xf32>
    %16 = arith.mulf %5, %11 : vector<8x4xf32>
    %17 = arith.addf %15, %16 : vector<8x4xf32>
    %18 = arith.mulf %7, %10 : vector<8x4xf32>
    %19 = arith.mulf %8, %11 : vector<8x4xf32>
    %20 = arith.subf %18, %19 : vector<8x4xf32>
    %21 = arith.mulf %8, %10 : vector<8x4xf32>
    %22 = arith.mulf %7, %11 : vector<8x4xf32>
    %23 = arith.addf %21, %22 : vector<8x4xf32>
    %24 = tpu.concatenate %14, %17 in 1 : vector<8x4xf32>, vector<8x4xf32> -> vector<8x8xf32>
    %25 = arith.truncf %24 : vector<8x8xf32> to vector<8x8xbf16>
    %c0_9 = arith.constant 0 : index
    %c0_10 = arith.constant 0 : index
    %26 = vector.load %arg8[%c0_9, %c0_10] : memref<8x8xbf16, #tpu.memory_space<vmem>>, vector<8x8xbf16>
    tpu.vector_store %arg8[%c0_9, %c0_10], %25 {strides = array<i32>} : memref<8x8xbf16, #tpu.memory_space<vmem>>, vector<8x8xbf16>,
    %27 = tpu.concatenate %20, %23 in 1 : vector<8x4xf32>, vector<8x4xf32> -> vector<8x8xf32>
    %28 = arith.truncf %27 : vector<8x8xf32> to vector<8x8xbf16>
    %c0_11 = arith.constant 0 : index
    %c0_12 = arith.constant 0 : index
    %29 = vector.load %arg9[%c0_11, %c0_12] : memref<8x8xbf16, #tpu.memory_space<vmem>>, vector<8x8xbf16>
    tpu.vector_store %arg9[%c0_11, %c0_12], %28 {strides = array<i32>} : memref<8x8xbf16, #tpu.memory_space<vmem>>, vector<8x8xbf16>,
    %30 = arith.truncf %9 : vector<8x8xf32> to vector<8x8xbf16>
    %c0_13 = arith.constant 0 : index
    %c0_14 = arith.constant 0 : index
    %31 = vector.load %arg10[%c0_13, %c0_14] : memref<8x8xbf16, #tpu.memory_space<vmem>>, vector<8x8xbf16>
    tpu.vector_store %arg10[%c0_13, %c0_14], %30 {strides = array<i32>} : memref<8x8xbf16, #tpu.memory_space<vmem>>, vector<8x8xbf16>,
    %32 = tpu.iota {dimensions = array<i32: 0>} : vector<8x1xi32>
    %33 = tpu.iota {dimensions = array<i32: 1>} : vector<1x8xi32>
    %34 = vector.broadcast %33 : vector<1x8xi32> to vector<8x8xi32>
    %35 = vector.broadcast %32 : vector<8x1xi32> to vector<8x8xi32>
    %36 = arith.cmpi sle, %34, %35 : vector<8x8xi32>
    %c0_i32 = arith.constant 0 : i32
    %c1_i32 = arith.constant 1 : i32
    %37 = arith.muli %c0_i32, %c1_i32 : i32
    %c0_i32_15 = arith.constant 0 : i32
    %38 = arith.addi %c0_i32_15, %37 : i32
    %c8_i32 = arith.constant 8 : i32
    %39 = arith.muli %38, %c8_i32 : i32
    %40 = tpu.assume_multiple %39, 8 : i32
    %41 = arith.index_cast %40 : i32 to index
    %c0_16 = arith.constant 0 : index
    %42 = vector.load %arg8[%41, %c0_16] : memref<8x8xbf16, #tpu.memory_space<vmem>>, vector<8x8xbf16>
    %cst_17 = arith.constant -1.000000e+30 : f32
    %43 = vector.broadcast %cst_17 : f32 to vector<8x1xf32>
    %cst_18 = arith.constant 0.000000e+00 : f32
    %44 = vector.broadcast %cst_18 : f32 to vector<8x1xf32>
    %cst_19 = arith.constant 0.000000e+00 : f32
    %45 = vector.broadcast %cst_19 : f32 to vector<8x8xf32>
    %c0_i32_20 = arith.constant 0 : i32
    %46 = arith.subi %38, %c0_i32_20 : i32
    %47 = arith.addi %c0_i32_20, %46 : i32
    %c1_i32_21 = arith.constant 1 : i32
    %48:3 = scf.for %arg11 = %c0_i32_20 to %47 step %c1_i32_21 iter_args(%arg12 = %43, %arg13 = %44, %arg14 = %45) -> (vector<8x1xf32>, vector<8x1xf32>, vector<8x8xf32>)  : i32 {
      %c8_i32_38 = arith.constant 8 : i32
      %86 = arith.muli %arg11, %c8_i32_38 : i32
      %87 = tpu.assume_multiple %86, 8 : i32
      %88 = arith.index_cast %87 : i32 to index
      %c0_39 = arith.constant 0 : index
      %89 = vector.load %arg9[%88, %c0_39] : memref<8x8xbf16, #tpu.memory_space<vmem>>, vector<8x8xbf16>
      %90 = arith.index_cast %87 : i32 to index
      %c0_40 = arith.constant 0 : index
      %91 = vector.load %arg10[%90, %c0_40] : memref<8x8xbf16, #tpu.memory_space<vmem>>, vector<8x8xbf16>
      %cst_41 = arith.constant dense<0.000000e+00> : vector<8x8xf32>
      %92 = tpu.matmul %42, %89, %cst_41 {dimension_numbers = #tpu.dot_dimension_numbers<[1], [1], [0], [0], [0, 0, 1, 0], [], []>} : vector<8x8xbf16>, vector<8x8xbf16>, vector<8x8xf32> -> vector<8x8xf32>
      %cst_42 = arith.constant dense<0xFF800000> : vector<8xf32>
      %93 = vector.multi_reduction <maximumf>, %92, %cst_42 [1] : vector<8x8xf32> to vector<8xf32>
      %94 = vector.shape_cast %93 : vector<8xf32> to vector<8x1xf32>
      %95 = arith.maximumf %arg12, %94 : vector<8x1xf32>
      %96 = arith.subf %arg12, %95 : vector<8x1xf32>
      %97 = math.exp %96 : vector<8x1xf32>
      %98 = vector.broadcast %95 : vector<8x1xf32> to vector<8x8xf32>
      %99 = arith.subf %92, %98 : vector<8x8xf32>
      %100 = math.exp %99 : vector<8x8xf32>
      %101 = arith.mulf %97, %arg13 : vector<8x1xf32>
      %cst_43 = arith.constant dense<0.000000e+00> : vector<8xf32>
      %102 = vector.multi_reduction <add>, %100, %cst_43 [1] : vector<8x8xf32> to vector<8xf32>
      %103 = vector.shape_cast %102 : vector<8xf32> to vector<8x1xf32>
      %104 = arith.addf %101, %103 : vector<8x1xf32>
      %105 = vector.broadcast %97 : vector<8x1xf32> to vector<8x8xf32>
      %106 = arith.mulf %105, %arg14 : vector<8x8xf32>
      %107 = arith.truncf %100 : vector<8x8xf32> to vector<8x8xbf16>
      %cst_44 = arith.constant dense<0.000000e+00> : vector<8x8xf32>
      %108 = tpu.matmul %107, %91, %cst_44 {dimension_numbers = #tpu.dot_dimension_numbers<[1], [0], [0], [1], [0, 0, 1, 1], [], []>} : vector<8x8xbf16>, vector<8x8xbf16>, vector<8x8xf32> -> vector<8x8xf32>
      %109 = arith.addf %106, %108 : vector<8x8xf32>
      scf.yield %95, %104, %109 : vector<8x1xf32>, vector<8x1xf32>, vector<8x8xf32>
    }
    %49 = arith.index_cast %40 : i32 to index
    %c0_22 = arith.constant 0 : index
    %50 = vector.load %arg9[%49, %c0_22] : memref<8x8xbf16, #tpu.memory_space<vmem>>, vector<8x8xbf16>
    %51 = arith.index_cast %40 : i32 to index
    %c0_23 = arith.constant 0 : index
    %52 = vector.load %arg10[%51, %c0_23] : memref<8x8xbf16, #tpu.memory_space<vmem>>, vector<8x8xbf16>
    %cst_24 = arith.constant dense<0.000000e+00> : vector<8x8xf32>
    %53 = tpu.matmul %42, %50, %cst_24 {dimension_numbers = #tpu.dot_dimension_numbers<[1], [1], [0], [0], [0, 0, 1, 0], [], []>} : vector<8x8xbf16>, vector<8x8xbf16>, vector<8x8xf32> -> vector<8x8xf32>
    %cst_25 = arith.constant -1.000000e+30 : f32
    %54 = vector.broadcast %cst_25 : f32 to vector<8x8xf32>
    %55 = arith.select %36, %53, %54 : vector<8x8xi1>, vector<8x8xf32>
    %cst_26 = arith.constant dense<0xFF800000> : vector<8xf32>
    %56 = vector.multi_reduction <maximumf>, %55, %cst_26 [1] : vector<8x8xf32> to vector<8xf32>
    %57 = vector.shape_cast %56 : vector<8xf32> to vector<8x1xf32>
    %58 = arith.maximumf %48#0, %57 : vector<8x1xf32>
    %59 = arith.subf %48#0, %58 : vector<8x1xf32>
    %60 = math.exp %59 : vector<8x1xf32>
    %61 = vector.broadcast %58 : vector<8x1xf32> to vector<8x8xf32>
    %62 = arith.subf %55, %61 : vector<8x8xf32>
    %63 = math.exp %62 : vector<8x8xf32>
    %64 = arith.mulf %60, %48#1 : vector<8x1xf32>
    %cst_27 = arith.constant dense<0.000000e+00> : vector<8xf32>
    %65 = vector.multi_reduction <add>, %63, %cst_27 [1] : vector<8x8xf32> to vector<8xf32>
    %66 = vector.shape_cast %65 : vector<8xf32> to vector<8x1xf32>
    %67 = arith.addf %64, %66 : vector<8x1xf32>
    %68 = vector.broadcast %60 : vector<8x1xf32> to vector<8x8xf32>
    %69 = arith.mulf %68, %48#2 : vector<8x8xf32>
    %70 = arith.truncf %63 : vector<8x8xf32> to vector<8x8xbf16>
    %cst_28 = arith.constant dense<0.000000e+00> : vector<8x8xf32>
    %71 = tpu.matmul %70, %52, %cst_28 {dimension_numbers = #tpu.dot_dimension_numbers<[1], [0], [0], [1], [0, 0, 1, 1], [], []>} : vector<8x8xbf16>, vector<8x8xbf16>, vector<8x8xf32> -> vector<8x8xf32>
    %72 = arith.addf %69, %71 : vector<8x8xf32>
    %73 = tpu.reciprocal %67 {approx = true} : vector<8x1xf32> -> vector<8x1xf32>
    %74 = vector.broadcast %73 : vector<8x1xf32> to vector<8x8xf32>
    %75 = arith.mulf %72, %74 : vector<8x8xf32>
    %76 = arith.truncf %75 : vector<8x8xf32> to vector<8x8xbf16>
    %c0_29 = arith.constant 0 : index
    %c0_30 = arith.constant 0 : index
    %c0_31 = arith.constant 0 : index
    %77 = vector.load %arg4[%c0_29, %c0_30, %c0_31] : memref<1x8x32xbf16, #tpu.memory_space<vmem>>, vector<1x8x32xbf16>
    %78 = vector.shape_cast %77 : vector<1x8x32xbf16> to vector<8x32xbf16>
    %cst_32 = arith.constant dense<0.000000e+00> : vector<8x32xf32>
    %79 = tpu.matmul %76, %78, %cst_32 {dimension_numbers = #tpu.dot_dimension_numbers<[1], [0], [0], [1], [0, 0, 1, 1], [], []>} : vector<8x8xbf16>, vector<8x32xbf16>, vector<8x32xf32> -> vector<8x32xf32>
    %c0_i32_33 = arith.constant 0 : i32
    %80 = arith.cmpi eq, %arg1, %c0_i32_33 : i32
    %81 = arith.extui %80 : i1 to i32
    %c0_i32_34 = arith.constant 0 : i32
    %82 = arith.cmpi ne, %81, %c0_i32_34 : i32
    scf.if %82 {
      %c0_38 = arith.constant 0 : index
      %86 = arith.index_cast %40 : i32 to index
      %c0_39 = arith.constant 0 : index
      %87 = vector.load %arg7[%c0_38, %86, %c0_39] : memref<1x8x32xf32, #tpu.memory_space<vmem>>, vector<1x8x32xf32>
      %88 = vector.shape_cast %87 : vector<1x8x32xf32> to vector<8x32xf32>
      %89 = vector.shape_cast %79 : vector<8x32xf32> to vector<1x8x32xf32>
      tpu.vector_store %arg7[%c0_38, %86, %c0_39], %89 {strides = array<i32>} : memref<1x8x32xf32, #tpu.memory_space<vmem>>, vector<1x8x32xf32>,
    } else {
    }
    %c0_i32_35 = arith.constant 0 : i32
    %83 = arith.cmpi sgt, %arg1, %c0_i32_35 : i32
    %84 = arith.extui %83 : i1 to i32
    %c0_i32_36 = arith.constant 0 : i32
    %85 = arith.cmpi ne, %84, %c0_i32_36 : i32
    scf.if %85 {
      %c0_38 = arith.constant 0 : index
      %86 = arith.index_cast %40 : i32 to index
      %c0_39 = arith.constant 0 : index
      %87 = vector.load %arg7[%c0_38, %86, %c0_39] : memref<1x8x32xf32, #tpu.memory_space<vmem>>, vector<1x8x32xf32>
      %88 = vector.shape_cast %87 : vector<1x8x32xf32> to vector<8x32xf32>
      %89 = arith.addf %88, %79 : vector<8x32xf32>
      %c0_40 = arith.constant 0 : index
      %90 = arith.index_cast %40 : i32 to index
      %c0_41 = arith.constant 0 : index
      %91 = vector.load %arg7[%c0_40, %90, %c0_41] : memref<1x8x32xf32, #tpu.memory_space<vmem>>, vector<1x8x32xf32>
      %92 = vector.shape_cast %91 : vector<1x8x32xf32> to vector<8x32xf32>
      %93 = vector.shape_cast %89 : vector<8x32xf32> to vector<1x8x32xf32>
      tpu.vector_store %arg7[%c0_40, %90, %c0_41], %93 {strides = array<i32>} : memref<1x8x32xf32, #tpu.memory_space<vmem>>, vector<1x8x32xf32>,
    } else {
    }
    %c1_i32_37 = arith.constant 1 : i32
    return
  }
  func.func @transform_0(%arg0: i32, %arg1: i32) -> (i32, i32, i32) {
    %c0_i32 = arith.constant 0 : i32
    %c0_i32_0 = arith.constant 0 : i32
    %c0_i32_1 = arith.constant 0 : i32
    return %arg0, %c0_i32, %c0_i32_0 : i32, i32, i32
  }
  func.func @transform_1(%arg0: i32, %arg1: i32) -> (i32, i32, i32) {
    %c0_i32 = arith.constant 0 : i32
    %c0_i32_0 = arith.constant 0 : i32
    %c0_i32_1 = arith.constant 0 : i32
    return %arg1, %c0_i32, %c0_i32_0 : i32, i32, i32
  }
  func.func @transform_2(%arg0: i32, %arg1: i32) -> (i32, i32, i32) {
    %c0_i32 = arith.constant 0 : i32
    %c0_i32_0 = arith.constant 0 : i32
    %c0_i32_1 = arith.constant 0 : i32
    return %arg1, %c0_i32, %c0_i32_0 : i32, i32, i32
  }
  func.func @transform_3(%arg0: i32, %arg1: i32) -> (i32, i32) {
    %c0_i32 = arith.constant 0 : i32
    %c0_i32_0 = arith.constant 0 : i32
    %c0_i32_1 = arith.constant 0 : i32
    return %c0_i32, %c0_i32_0 : i32, i32
  }
  func.func @transform_4(%arg0: i32, %arg1: i32) -> (i32, i32) {
    %c0_i32 = arith.constant 0 : i32
    %c0_i32_0 = arith.constant 0 : i32
    %c0_i32_1 = arith.constant 0 : i32
    return %c0_i32, %c0_i32_0 : i32, i32
  }
  func.func @transform_5(%arg0: i32, %arg1: i32) -> (i32, i32, i32) {
    %c0_i32 = arith.constant 0 : i32
    %c0_i32_0 = arith.constant 0 : i32
    %c0_i32_1 = arith.constant 0 : i32
    return %arg0, %c0_i32, %c0_i32_0 : i32, i32, i32
  }
}

</mosaic_0001>

<bundles_post_ra>
// kernel: tpu_custom_call.1
= control target key start
LH: loop header
LB: loop body
LE: loop exit
PB: predicated region body
PF: predicated region fallthrough
CT: control target
= control target key end

     0   :  { %s1159_s0 = inlined_call_operand.vmem [shape: bf16[2,8,32], index: 0, kind: input, shape index: {}]   ;;  %s1160_s1 = inlined_call_operand.vmem [shape: bf16[4,32,24], index: 1, kind: input, shape index: {}]   ;;  %s1161_s2 = inlined_call_operand.vmem [shape: bf16[4,8,32], index: 2, kind: input, shape index: {}]   ;;  %s1162_s3 = inlined_call_operand.vmem [shape: f32[8,4], index: 3, kind: input, shape index: {}]   ;;  %s1163_s4 = inlined_call_operand.vmem [shape: f32[8,4], index: 4, kind: input, shape index: {}]   ;;  %s1164_s5 = inlined_call_operand.hbm [shape: f32[2,8,32], index: 5, kind: output, shape index: {}]  }
   0x1   :  { %1166 = sst [smem:[#allocation8_spill]] %s1163_s4 }
   0x2   :  { %10 = vsyncpa [#allocation6], 0 }
   0x3   :  { %12 = vsyncpa [#allocation6 + $0x1], 0  ;;  %s980_s18 = smov 0   ;;  %s982_s19 = smov 0  }
   0x4   :  { %s984_s20 = smov 0   ;;  %s986_s21 = smov 0  }
   0x5   :  { %s988_s22 = smov 0   ;;  %s990_s23 = smov 0  }
   0x6   :  { %s992_s24 = smov 0   ;;  %s994_s25 = smov 0  }
   0x7 LB: > { %s695_s26 = sadd.s32 4294967295, %s939_s25   ;;  %s696_s27 = sadd.s32 4294967294, %s939_s25   ;;  %s939_s25 = sphi %s994_s25, %s18_s25   ;;  %s935_s24 = sphi %s992_s24, %s1177_s24   ;;  %s931_s23 = sphi %s990_s23, %s1176_s23   ;;  %s927_s22 = sphi %s988_s22, %s1175_s22   ;;  %s923_s21 = sphi %s986_s21, %s1174_s21   ;;  %s919_s20 = sphi %s984_s20, %s1173_s20   ;;  %s915_s19 = sphi %s982_s19, %s1172_s19   ;;  %s911_s18 = sphi %s980_s18, %s1171_s18  }
   0x8   : > { %s27_s28 = sadd.s32 1, %s931_s23  ;;  %s30_s29 = sadd.s32 1, %s935_s24 }
   0x9   : > { %p28_p0 = scmp.ge.s32.totalorder %s27_s28, 4  ;;  %p167_p1 = scmp.ne.s32.totalorder %s919_s20, %s915_s19 }
   0xa   : > { %p168_p2 = scmp.eq.s32.totalorder %s695_s26, 7  ;;  %p173_p4 = scmp.ne.s32.totalorder %s915_s19, %s911_s18 }
   0xb   : > { %s1179_s28 = smov (%p28_p0, %s27_s28), 0  ;;  %s1181_s29 = smov (!%p28_p0, %s30_s29), %s935_s24 }
   0xc   : > { %p1029_p3 = por %p168_p2, %p167_p1  ;;  %p32_p5 = scmp.ge.s32.totalorder %s1181_s29, 2 }
   0xd   : > { %p174_p6 = scmp.eq.s32.totalorder %s696_s27, 7  ;;  %p699_p7 = scmp.ge.s32.totalorder %s939_s25, 1 }
   0xe   : > { %p220_p8 = scmp.lt.s32.totalorder %s939_s25, 9  ;;  %s1183_s29 = smov (%p32_p5, %s1181_s29), 0 }
   0xf   : > { %p1039_p9 = por %p174_p6, %p173_p4  ;;  %s154_s7 = ssub.s32 %s935_s24, %s1183_s29 }
  0x10   : > { %p221_p10 = pnand %p699_p7, %p220_p8  ;;  %s157_s8 = sadd.s32 1, %s919_s20 }
  0x11   : > { %p155_p11 = scmp.eq.s32.totalorder %s154_s7, 0  ;;  %s1165_s10 = sand.u32 (!%p221_p10), 1, %s915_s19  }
  0x12   : > { %224 = sbr.rel (%p221_p10) target bundleno = 1274 (0x4fa), region = 40  ;;  %p260_p12 = scmp.lt.s32.totalorder (!%p221_p10), %s923_s21, 3 }
  0x13   : > { %s1047_s9 = scalar_select %p155_p11, %s919_s20, %s157_s8  }
  0x14   : > { %s1169_s4 = sld [smem:[#allocation8_spill]] (!%p221_p10)  ;;  %s1056_s13 = sshll.u32 (!%p221_p10), %s1165_s10, 3 }
  0x15   : > { %p256_p13 = scmp.lt.s32.totalorder (!%p221_p10), %s927_s22, 1  ;;  %s943_s15 = smov (!%p221_p10), 12  }
  0x16   : > { %s944_s12 = smov (!%p221_p10), 8   ;;  %p712_p0 = scmp.ne.s32.totalorder (!%p221_p10), %s923_s21, 0 }
  0x17   : > { %v941_v1 = vmov 0.0   ;;  %vm942_vm0 = vmmov 0   ;;  %s1066_s14 = scalar_select %p260_p12, %s923_s21, 3  ;;  %v1071_v2 = vld [vmem:[%s1162_s3] sm:$0xff]  ;;  %vm287_vm1 = vcmask 261120   ;;  %vm384_vm2 = vcmask 60416  }
  0x18   : > { %729 = vmatprep.subr.bf16.mxu0 %v941_v1  ;;  %733 = vmatprep.mubr.msk.bf16.mxu0 %vm942_vm0, %v941_v1  ;;  %s257_s26 = scalar_select %p256_p13, %s927_s22, 1  ;;  %vm480_vm3 = vcmask 1043456   ;;  %vm381_vm4 = vcmask 31744   ;;  %vm413_vm5 = vcmask 64512   ;;  %v405_v47 = vlaneseq }
  0x19   : > { %737 = vmatprep.subr.bf16.mxu1 %v941_v1  ;;  %739 = vmatprep.mubr.msk.bf16.mxu1 %vm942_vm0, %v941_v1  ;;  %s718_s27 = sshll.u32 %s1066_s14, 4 }
  0x1a   : > { %v332_v0 = vld [vmem:[%s1169_s4] sm:$0xff]  ;;  %s264_s11 = scalar_lea.vmem %s1160_s1, %s718_s27  ;;  %355 = vrot.lane.b32.xlu1 %v1071_v2, %s944_s12  ;;  %s701_s10 = sshll.u32 %s257_s26, 2  ;;  %v406_v48 = vshrl.u32 %v405_v47, 7  ;;  %v408_v49 = vand.u32 127, %v405_v47 }
  0x1b   : > { %359 = vrot.lane.b32.xlu0 %v332_v0, %s943_s15  ;;  %v839_v3 = vld [vmem:[%s264_s11 + $0x8] sm:$0xff]   ;;  %v840_v4 = vld [vmem:[%s264_s11] sm:$0xff]   ;;  %s259_s17 = scalar_lea.vmem %s1159_s0, %s701_s10  ;;  %s945_s4 = smov 4  }
  0x1c   : > { %730 = vmatpush3.bf16.msra.mxu0 %v839_v3  ;;  %v270_v5 = vld [vmem:[%s259_s17] sm:$0xf]  ;;  %s946_s10 = smov 124   ;;  %s948_s26 = smov 120   ;;  %vm409_vm6 = vcmp.le.s32.totalorder %v408_v49, %v406_v48 }
  0x1d   : > { %731 = vmatprep.subr.bf16.mxu0 %v941_v1  ;;  %s704_s27 = sshll.u32 %s1066_s14, 2  ;;  %s255_s14 = scalar_lea.vmem [#allocation5], %s1056_s13 }
  0x1e   : > { %368 = vrot.lane.b32.xlu1 %v1071_v2, %s943_s15  ;;  %s947_s15 = smov 112   ;;  %s268_s11 = scalar_lea.vmem %s1161_s2, %s704_s27 }
  0x1f   : > { %372 = vrot.lane.b32.xlu0 %v332_v0, %s944_s12  ;;  %v528_v63 = vld [vmem:[%s268_s11] sm:$0xf] }
  0x20   : > { %732 = vmatpush3.bf16.msra.mxu0 %v840_v4 }
  0x21   : > { %743 = vmatprep.subr.bf16.mxu0 %v941_v1 }
  0x23   : > { %734 = vmatmul.mubr.msk.bf16.vlgmr.msra.gmra.mxu0 %vm287_vm1, %v270_v5 }
  0x24   : > { %745 = vmatprep.mubr.msk.bf16.mxu0 %vm942_vm0, %v941_v1 }
  0x8c   : > { %v356_v16 = vpop.permute.xlu1 %355 }
  0x8d   : > { %v360_v6 = vpop.permute.xlu0 %359 }
  0x90   : > { %v369_v17 = vpop.permute.xlu1 %368 }
  0x91   : > { %v373_v7 = vpop.permute.xlu0 %372 }
  0xe3   : > { %v325_v8 = vpop.f32.mrf.mxu0 }
  0xe4   : > { %v375_v9 = vmul.f32 %v373_v7, %v325_v8  ;;  %v362_v10 = vmul.f32 %v360_v6, %v325_v8  ;;  %v349_v14 = vmul.f32 %v332_v0, %v325_v8  ;;  %v719_v15 = vpack.c.bf16 %v325_v8, %v325_v8 }
  0xe5   : > { %v735_v11 = vpop.f32.mrf.mxu0  ;;  %v371_v18 = vmul.f32 %v369_v17, %v325_v8  ;;  %v358_v19 = vmul.f32 %v356_v16, %v325_v8  ;;  %v333_v38 = vmul.f32 %v1071_v2, %v325_v8 }
  0xe6   : > { %377 = vrot.lane.b32.xlu1 %v375_v9, %s945_s4  ;;  %364 = vrot.lane.b32.xlu0 %v362_v10, %s946_s10 }
  0xe7   : > { %v328_v12 = vpop.f32.mrf.mxu0 }
  0xe9   : > { %v736_v13 = vpop.f32.mrf.mxu0 }
  0xea   : > { %335 = vrot.lane.b32.xlu0 %v332_v0, %s945_s4  ;;  %v533_v0 = vsel %vm480_vm3, %v528_v63, 0 }
  0xee   : > { %345 = vrot.lane.b32.xlu0 %v1071_v2, %s945_s4 }
  0xf2   : > { %351 = vrot.lane.b32.xlu0 %v349_v14, %s945_s4 }
  0xf6   : > { %401 = vrot.lane.b32.xlu0 %v719_v15, %s947_s15 }
 0x158   : > { %v378_v20 = vpop.permute.xlu1 %377  ;;  %v365_v21 = vpop.permute.xlu0 %364 }
 0x159   : > { %v380_v22 = vadd.f32 %v378_v20, %v371_v18  ;;  %v367_v23 = vsub.f32 %v358_v19, %v365_v21 }
 0x15b   : > { %v834_v24 = vpack.i.bf16 %v380_v22, %v367_v23 }
 0x15c   : > { %v336_v25 = vpop.permute.xlu0 %335 }
 0x15d   : > { %835 = vrot.lane.b32.xlu1 %v834_v24, %s948_s26  ;;  %v338_v26 = vmul.f32 %v336_v25, %v325_v8 }
 0x160   : > { %v346_v27 = vpop.permute.xlu0 %345 }
 0x161   : > { %340 = vrot.lane.b32.xlu1 %v338_v26, %s946_s10  ;;  %v348_v28 = vmul.f32 %v346_v27, %v325_v8 }
 0x164   : > { %v352_v29 = vpop.permute.xlu0 %351 }
 0x165   : > { %v354_v30 = vadd.f32 %v352_v29, %v348_v28 }
 0x168   : > { %v402_v31 = vpop.permute.xlu0 %401 }
 0x169   : > { %404 = vst.msk [vmem:[#allocation4] sm:$0xf] %vm384_vm2, %v402_v31 }
 0x170   : > { %v412_v32 = vld [vmem:[#allocation4] sm:$0xf] }
 0x171   : > { %v482_v33 = vsel %vm480_vm3, %v412_v32, 0 }
 0x172   : > { %744 = vmatpush3.bf16.msra.mxu0 %v482_v33 }
 0x1cf   : > { %v836_v34 = vpop.permute.xlu1 %835 }
 0x1d0   : > { %v838_v35 = vunpack.i.h.bf16 %v836_v34  ;;  %v837_v36 = vunpack.i.l.bf16 %v836_v34 }
 0x1d2   : > { %v394_v37 = vsel %vm381_vm4, %v837_v36, %v838_v35 }
 0x1d3   : > { %v395_v39 = vpack.c.bf16 %v394_v37, %v394_v37  ;;  %v341_v40 = vpop.permute.xlu1 %340 }
 0x1d4   : > { %v343_v41 = vsub.f32 %v333_v38, %v341_v40 }
 0x1d5   : > { %396 = vst.msk [vmem:[#allocation3] sm:$0xf] %vm384_vm2, %v395_v39 }
 0x1d6   : > { %v382_v42 = vsel %vm381_vm4, %v343_v41, %v354_v30 }
 0x1d7   : > { %v383_v43 = vpack.c.bf16 %v382_v42, %v382_v42 }
 0x1d9   : > { %385 = vst.msk [vmem:[#allocation2] sm:$0xf] %vm384_vm2, %v383_v43 }
 0x1dc   : > { %v411_v44 = vld [vmem:[#allocation3] sm:$0xf] }
 0x1dd   : > { %v418_v45 = vsel %vm413_vm5, %v411_v44, 0 }
 0x1de   : > { %738 = vmatpush3.bf16.xpose.msra.mxu1 %v418_v45 }
 0x1df   : > { %749 = vmatprep.subr.bf16.mxu1 %v941_v1 }
 0x1e0   : > { %v410_v46 = vld [vmem:[#allocation2] sm:$0xf] }
 0x1e5   : > { %740 = vmatmul.mubr.msk.bf16.vlgmr.msra.gmra.mxu1 %vm413_vm5, %v410_v46 }
 0x1e6   : > { %751 = vmatprep.mubr.msk.bf16.mxu1 %vm942_vm0, %v941_v1  ;;  %750 = vmatpush3.bf16.msra.mxu1 %v533_v0 }
 0x2a5   : > { %v454_v50 = vpop.f32.mrf.mxu1 }
 0x2a6   : > { %v460_v51 = vsel %vm409_vm6, %v454_v50, -1e+30 }
 0x2a7   : > { %v741_v52 = vpop.f32.mrf.mxu1  ;;  %v461_v53 = vsel %vm413_vm5, %v460_v51, -inf }
 0x2a8   : > { %462 = vmax.xlane.f32.xlu1 %v461_v53 }
 0x2a9   : > { %v457_v54 = vpop.f32.mrf.mxu1 }
 0x2ab   : > { %v742_v55 = vpop.f32.mrf.mxu1 }
 0x331   : > { %v463_v56 = vpop.xlane.xlu1 %462 }
 0x332   : > { %v464_v57 = vmax.f32 %v463_v56, -1e+30 }
 0x334   : > { %v468_v58 = vsub.f32 %v460_v51, %v464_v57  ;;  %v465_v1 = vsub.f32 -1e+30, %v464_v57 }
 0x336   : > { %v469_v59 = vmul.f32 1.442695, %v468_v58  ;;  %v466_v2 = vmul.f32 1.442695, %v465_v1 }
 0x338   : > { %841 = vpow2.f32 %v469_v59 }
 0x339   : > { %843 = vpow2.f32 %v466_v2 }
 0x345   : > { %v842_v60 = vpop.eup %841 }
 0x346   : > { %v472_v61 = vsel %vm413_vm5, %v842_v60, 0.0  ;;  %v476_v62 = vpack.c.bf16 %v842_v60, %v842_v60  ;;  %v844_v3 = vpop.eup %843 }
 0x347   : > { %473 = vadd.xlane.f32.xlu0 %v472_v61  ;;  %v471_v5 = vmul.f32 0.0, %v844_v3 }
 0x348   : > { %746 = vmatmul.mubr.msk.bf16.vlgmr.msra.gmra.mxu0 %vm413_vm5, %v476_v62 }
 0x3d0   : > { %v474_v4 = vpop.xlane.xlu0 %473 }
 0x3d1   : > { %v475_v6 = vadd.f32 %v474_v4, %v471_v5 }
 0x3d3   : > { %845 = vrcp.f32 %v475_v6 }
 0x3e0   : > { %v846_v9 = vpop.eup %845 }
 0x408   : > { %v518_v7 = vpop.f32.mrf.mxu0 }
 0x409   : > { %v524_v8 = vadd.f32 %v518_v7, %v471_v5 }
 0x40a   : > { %v747_v10 = vpop.f32.mrf.mxu0 }
 0x40b   : > { %v526_v11 = vmul.f32 %v846_v9, %v524_v8 }
 0x40c   : > { %v521_v12 = vpop.f32.mrf.mxu0 }
 0x40d   : > { %v527_v13 = vpack.c.bf16 %v526_v11, %v526_v11 }
 0x40e   : > { %v748_v14 = vpop.f32.mrf.mxu0 }
 0x40f   : > { %752 = vmatmul.mubr.msk.bf16.vlgmr.msra.gmra.mxu1 %vm413_vm5, %v527_v13 }
 0x4cf   : > { %v569_v15 = vpop.f32.mrf.mxu1 }
 0x4d1   : > { %v753_v16 = vpop.f32.mrf.mxu1  ;;  %578 = sbr.rel (%p712_p0) target bundleno = 1239 (0x4d7), region = 44 }
 0x4d3   : > { %v572_v17 = vpop.f32.mrf.mxu1 }
 0x4d5   : > { %v754_v18 = vpop.f32.mrf.mxu1 }
 0x4d6   : > { %579 = vst.msk [vmem:[%s255_s14] sm:$0xff] %vm287_vm1, %v569_v15 }
 0x4d7 PF: > { %p713_p1 = scmp.le.s32.totalorder %s923_s21, 0 }
 0x4d9   : > { %583 = sbr.rel (%p713_p1) target bundleno = 1250 (0x4e2), region = 48 }
 0x4de   : > { %v584_v19 = vld [vmem:[%s255_s14] sm:$0xff] }
 0x4df   : > { %v585_v20 = vadd.f32 %v584_v19, %v569_v15 }
 0x4e1   : > { %586 = vst.msk [vmem:[%s255_s14] sm:$0xff] %vm287_vm1, %v585_v20 }
 0x4e2 PF: > { %s715_s12 = sshll.u32 %s927_s22, 7  ;;  %s601_s4 = sshll.u32 %s255_s14, 4  ;;  %s602_s4 = int_to_ptr.vmem [resolvable:$true] %s601_s4 }
 0x4e3   : > { %s599_s17 = scalar_lea.hbm %s1164_s5, %s715_s12  ;;  %s1170_s10 = sand.u32 1, %s915_s19  }
 0x4e4   : > { %s588_s15 = scalar_lea.sflag [#allocation6], %s1170_s10  ;;  %s847_s26 = scalar_lea.vmem %s602_s4, 128 }
 0x4e5   : > { %p848_p2 = scmp.ne.s32.totalorder %s602_s4, %s847_s26  ;;  %s949_s21 = smov [#allocation5]  }
 0x4e6   : > { %s851_s27 = sshll.u32 %s949_s21, 4  ;;  %s852_s27 = int_to_ptr.vmem [resolvable:$false] %s851_s27 }
 0x4e7   : > { %p849_p4 = pnand %p848_p2, %p1029_p3  ;;  %s853_s7 = scalar_lea.vmem %s852_s27, 256 }
 0x4e8   : > { %p854_p6 = scmp.lt.s32.totalorder %s602_s4, %s852_s27  ;;  %p855_p7 = scmp.lt.s32.totalorder %s853_s7, %s847_s26 }
 0x4e9   : > { %p850_p5 = pneg %p849_p4 }
 0x4ea   : > { %p856_p8 = por %p855_p7, %p854_p6 }
 0x4ec   : > { %p857_p10 = pnand %p856_p8, %p850_p5 }
 0x4ee   : > { %860 = shalt.err (!%p857_p10)
}
 0x4ef   : > { %s861_s22 = scalar_lea.hbm %s599_s17, 128  ;;  %s865_s14 = scalar_lea.hbm %s1164_s5, 256 }
 0x4f0   : > { %p862_p11 = scmp.ne.s32.totalorder %s599_s17, %s861_s22  ;;  %p866_p0 = scmp.lt.s32.totalorder %s599_s17, %s1164_s5 }
 0x4f1   : > { %p867_p1 = scmp.lt.s32.totalorder %s865_s14, %s861_s22 }
 0x4f2   : > { %p863_p12 = pnand %p862_p11, %p1029_p3 }
 0x4f3   : > { %p868_p2 = por %p867_p1, %p866_p0 }
 0x4f4   : > { %p864_p13 = pneg %p863_p12 }
 0x4f6   : > { %p869_p4 = pnand %p868_p2, %p864_p13 }
 0x4f8   : > { %872 = shalt.err (!%p869_p4)
}
 0x4f9   : > { %755 = dma.vmem_to_hbm [thread:$0]  (%p1029_p3), %s602_s4, 128, %s599_s17, %s588_s15  }
 0x4fa PF: > { %p761_p5 = scmp.ge.s32.totalorder %s939_s25, 2  ;;  %s613_s13 = sand.u32 1, %s911_s18  }
 0x4fb   : > { %s614_s10 = scalar_lea.sflag [#allocation6], %s613_s13 }
 0x4fc   : > { %p758_p6 = pnand %p761_p5, %p1039_p9 }
 0x4fe   : > { %p759_p7 = pneg %p758_p6 }
 0x500   : > { %906 = dma.done.wait (%p759_p7), %s614_s10, 128  }
 0x501   : > { %908 = vsyncadd (%p759_p7), %s614_s10, 4294967168  ;;  %s18_s25 = sadd.s32 1, %s939_s25   ;;  %s1171_s18 = smov %s915_s19 }
 0x502   : > { %p15_p8 = scmp.ge.s32.totalorder %s18_s25, 10   ;;  %s1172_s19 = smov %s919_s20 }
 0x503   : > { %s1173_s20 = smov %s1047_s9  ;;  %s1174_s21 = smov %s931_s23 }
 0x504   : > { %s1175_s22 = smov %s935_s24  ;;  %s1176_s23 = smov %s1179_s28 }
 0x505   : > { %s1177_s24 = smov %s1183_s29  ;;  %17 = sbr.rel (!%p15_p8) target bundleno = 7 (0x7), region = 89 }
 0x50a   :  { %619 = vsyncpa [#allocation6], 1 }
 0x50b   :  { %621 = vsyncpa [#allocation6 + $0x1], 1 }

</bundles_post_ra>
